<compile_context>
chip_gen: v7x
topology: tpu7x:2x2x1
jax: 0.10.0
libtpu: 0.0.40
codegen_flags: <defaults>
</compile_context>

<pallas_src>
import math

import jax
import jax.numpy as jnp
from jax.experimental import pallas as pl
from jax.experimental.pallas import tpu as pltpu


def _log_sigmoid(x):
    # stable log(sigmoid(x)) = min(x, 0) - log(1 + exp(-|x|))
    return jnp.minimum(x, 0.0) - jnp.log(1.0 + jnp.exp(-jnp.abs(x)))


def _hw_defaults():
    """(h_tile, t_tile, vmem_limit_bytes) sized per TPU generation."""
    vmem_cap = 64 * 1024 * 1024
    try:
        info = pltpu.get_tpu_info()
        vmem_cap = int(getattr(info, "vmem_capacity_bytes", vmem_cap))
    except Exception:
        pass
    if vmem_cap <= 64 * 1024 * 1024:            # v7x-class: 64 MiB VMEM / TC
        return 256, 256, (7 * vmem_cap) // 8    # ~56 MiB, smaller H tiles
    # v5e / v6e: 128 MiB physical VMEM
    return 512, 256, min((7 * vmem_cap) // 8, 112 * 1024 * 1024)


def _qrnn_kernel(x_ref, w_ref, b_ref, tri_ref, o_ref, csum_c, m_c, r_c):
    # x_ref  : (tT, K*C)   bf16  unfolded input, one (batch, time-tile)
    # w_ref  : (K*C, 2*tH) bf16  fused [z | f] conv weights for this H tile
    # b_ref  : (1, 2*tH)   f32   fused [z | f] biases for this H tile
    # tri_ref: (tT, tT)    bf16  lower-triangular ones (inclusive), resident
    # o_ref  : (tT, tH)          hidden output for this (batch, H, time) tile
    # csum_c : (1, tH) f32 carry: sum of log_f over previous time tiles
    # m_c    : (1, tH) f32 carry: running max of a over previous time
    # r_c    : (1, tH) f32 carry: running sum of exp(a - m) over previous time
    tH = o_ref.shape[-1]

    @pl.when(pl.program_id(2) == 0)
    def _():
        csum_c[...] = jnp.zeros_like(csum_c)
        m_c[...] = jnp.full_like(m_c, -jnp.inf)
        r_c[...] = jnp.zeros_like(r_c)

    # Fused Conv1d('same'): one bf16 MXU matmul yields both gates for the tile.
    raw = jnp.dot(x_ref[...], w_ref[...], preferred_element_type=jnp.float32)
    raw = raw + b_ref[...]
    raw_z = raw[:, :tH]
    raw_f = raw[:, tH:]

    log_1mf = _log_sigmoid(-raw_f)
    log_f = log_1mf + raw_f          # log sigmoid(x) = log sigmoid(-x) + x
    log_z = _log_sigmoid(raw_z)

    # Inclusive local prefix sum of log_f: hi/lo bf16 split -> two bf16 MXU
    # matmuls with f32 accumulation (near-f32 accuracy, far cheaper than a
    # multi-pass f32 contraction).
    tri = tri_ref[...]
    lf_hi = log_f.astype(jnp.bfloat16)
    lf_lo = (log_f - lf_hi.astype(jnp.float32)).astype(jnp.bfloat16)
    local_cs = (jnp.dot(tri, lf_hi, preferred_element_type=jnp.float32)
                + jnp.dot(tri, lf_lo, preferred_element_type=jnp.float32))
    cumsum_f = csum_c[...] + local_cs

    # gates = log_f - cumsum_t(log_f); the "+ total_f" of the reference cancels
    # in exp(log_hidden - gates) and is dropped.
    gates = log_f - cumsum_f

    # Online (flash-style) logcumsumexp of a = log_z + log_1mf + gates.
    a = log_z + log_1mf + gates
    m_prev = m_c[...]
    m_new = jnp.maximum(m_prev, jnp.max(a, axis=0, keepdims=True))
    r_scaled = r_c[...] * jnp.exp(m_prev - m_new)
    p = jnp.exp(a - m_new).astype(jnp.bfloat16)
    cs = r_scaled + jnp.dot(tri, p, preferred_element_type=jnp.float32)

    # hidden = exp(log_hidden - gates) = cs * exp(m_new - gates)
    o_ref[...] = (cs * jnp.exp(m_new - gates)).astype(o_ref.dtype)

    # Carries for the next time tile (f32 column sums, cheap XLU reduction).
    csum_c[...] = csum_c[...] + jnp.sum(log_f, axis=0, keepdims=True)
    m_c[...] = m_new
    r_c[...] = cs[-1:, :]


def qrnn_layer_noncausal(x, wz, wf, bz, bf, kernel_size, *,
                         h_tile=None, t_tile=None, out_dtype=jnp.float32):
    """x: (B, T, C) f32; wz/wf: (H, C, K) PyTorch Conv1d weights; bz/bf: (H,).

    Returns hidden: (B, T, H) in `out_dtype` (init_state=None path of the
    module).  Pass out_dtype=jnp.bfloat16 to halve the output HBM write if the
    consumer tolerates it."""
    B, T, C = x.shape
    H = wz.shape[0]
    K = kernel_size
    KC = K * C

    def_th, def_tt, vmem_limit = _hw_defaults()
    if h_tile is None:
        h_tile = def_th
    if t_tile is None:
        t_tile = def_tt
    t_tile = max(8, (t_tile // 8) * 8)

    # Conv1d padding='same' (stride=1, dilation=1): PyTorch pads
    # left=(K-1)//2, right=K-1-left.  Unfold the K taps onto the lane axis
    # -> (B, T, K*C); bf16 operands for the MXU (layout plumbing in wrapper).
    pad_left = (K - 1) // 2
    pad_right = (K - 1) - pad_left
    xp = jnp.pad(x, ((0, 0), (pad_left, pad_right), (0, 0)))
    x_unf = jnp.concatenate([xp[:, k:k + T, :] for k in range(K)],
                            axis=-1).astype(jnp.bfloat16)

    # Time tiling: pad at the end (causal prefix sums -> trailing pad rows
    # cannot influence real timesteps).
    T8 = ((T + 7) // 8) * 8
    tT = T8 if T8 <= t_tile else t_tile
    Tp = ((T + tT - 1) // tT) * tT
    nT = Tp // tT
    if Tp != T:
        x_unf = jnp.pad(x_unf, ((0, 0), (0, Tp - T), (0, 0)))

    # Hidden padded to a lane-dense multiple of 128; pick the H tile size.
    Hp = max(128, ((H + 127) // 128) * 128)
    tH = min(h_tile, Hp)
    tH = max(128, (tH // 128) * 128)
    while Hp % tH:
        tH -= 128
    nH = Hp // tH

    # (H, C, K) -> (K*C, Hp), interleaved [z | f] per H tile so a single
    # BlockSpec column window holds both gates' weights for that tile.
    def to_mat(w):
        m_ = jnp.transpose(w, (2, 1, 0)).reshape(KC, H)
        return jnp.pad(m_, ((0, 0), (0, Hp - H)))

    wz_m = to_mat(wz).reshape(KC, nH, 1, tH)
    wf_m = to_mat(wf).reshape(KC, nH, 1, tH)
    w_fused = jnp.concatenate([wz_m, wf_m], axis=2).reshape(
        KC, nH * 2 * tH).astype(jnp.bfloat16)

    bz_p = jnp.pad(bz, (0, Hp - H)).reshape(nH, 1, tH)
    bf_p = jnp.pad(bf, (0, Hp - H)).reshape(nH, 1, tH)
    b_fused = jnp.concatenate([bz_p, bf_p], axis=1).reshape(
        1, nH * 2 * tH).astype(jnp.float32)

    # Small resident (tT, tT) lower-triangular ones matrix (exact in bf16);
    # constant index map + single buffer (no pointless double buffering).
    tri = jnp.tril(jnp.ones((tT, tT), jnp.bfloat16))

    out_p = pl.pallas_call(
        _qrnn_kernel,
        out_shape=jax.ShapeDtypeStruct((B, Tp, Hp), out_dtype),
        grid_spec=pltpu.PrefetchScalarGridSpec(
            num_scalar_prefetch=0,
            grid=(B, nH, nT),
            in_specs=[
                pl.BlockSpec((None, tT, KC), lambda b, h, t: (b, t, 0)),
                pl.BlockSpec((KC, 2 * tH), lambda b, h, t: (0, h)),
                pl.BlockSpec((1, 2 * tH), lambda b, h, t: (0, h)),
                pl.BlockSpec((tT, tT), lambda b, h, t: (0, 0),
                             pipeline_mode=pl.Buffered(1)),
            ],
            out_specs=pl.BlockSpec((None, tT, tH), lambda b, h, t: (b, t, h)),
            scratch_shapes=[
                pltpu.VMEM((1, tH), jnp.float32),   # running cumsum of log_f
                pltpu.VMEM((1, tH), jnp.float32),   # running max of a
                pltpu.VMEM((1, tH), jnp.float32),   # running rescaled sum
            ],
        ),
        compiler_params=pltpu.CompilerParams(
            dimension_semantics=("parallel", "parallel", "arbitrary"),
            vmem_limit_bytes=int(vmem_limit)),
    )(x_unf, w_fused, b_fused, tri)

    if Tp != T or Hp != H:
        out_p = out_p[:, :T, :H]
    return out_p


def qrnn_ref(x, wz, wf, bz, bf, K):
    """Pure-JAX f32 reference of the PyTorch forward (init_state=None)."""
    B, T, C = x.shape
    pad_left = (K - 1) // 2
    xp = jnp.pad(x, ((0, 0), (pad_left, (K - 1) - pad_left), (0, 0)))
    wz_t = jnp.transpose(wz, (2, 1, 0))
    wf_t = jnp.transpose(wf, (2, 1, 0))
    raw_z = bz[None, None, :] + sum(
        jnp.einsum('btc,ch->bth', xp[:, k:k + T, :], wz_t[k]) for k in range(K))
    raw_f = bf[None, None, :] + sum(
        jnp.einsum('btc,ch->bth', xp[:, k:k + T, :], wf_t[k]) for k in range(K))
    log_1mf = jax.nn.log_sigmoid(-raw_f)
    log_z = jax.nn.log_sigmoid(raw_z)
    log_f = jax.nn.log_sigmoid(raw_f)
    cs = jnp.cumsum(log_f, axis=1)
    gates = log_f - cs + cs[:, -1:, :]
    a = log_z + log_1mf + gates
    m = jnp.max(a, axis=1, keepdims=True)
    log_hidden = jnp.log(jnp.cumsum(jnp.exp(a - m), axis=1)) + m
    return jnp.exp(log_hidden - gates)


if __name__ == "__main__":
    B, T, C_IN, H, K = 2, 24, 4, 32, 3

    key = jax.random.PRNGKey(0)
    kx, kwz, kwf, kbz, kbf = jax.random.split(key, 5)

    std = 1.0 / math.sqrt(H)  # matches reset_parameters()
    x = jax.random.normal(kx, (B, T, C_IN), dtype=jnp.float32)
    wz = jax.random.uniform(kwz, (H, C_IN, K), jnp.float32, -std, std)
    wf = jax.random.uniform(kwf, (H, C_IN, K), jnp.float32, -std, std)
    bz = jax.random.uniform(kbz, (H,), jnp.float32, -std, std)
    bf = jax.random.uniform(kbf, (H,), jnp.float32, -std, std)

    # t_tile=8 forces 3 time tiles so the flash-style running carries are
    # actually exercised at this small sequence length.
    hidden = qrnn_layer_noncausal(x, wz, wf, bz, bf, K, t_tile=8)
    hidden = jax.block_until_ready(hidden)

    ref = qrnn_ref(x, wz, wf, bz, bf, K)
    assert hidden.shape == (B, T, H)
    max_err = float(jnp.max(jnp.abs(hidden - ref)))
    # bf16 MXU operands (conv + logcumsumexp) vs a pure-f32 reference.
    assert jnp.allclose(hidden, ref, rtol=3e-2, atol=3e-2), max_err

    print("KERNEL_OK")
</pallas_src>

<mosaic_0001>
module attributes {stable_mosaic.version = 11 : i64} {
  func.func @_qrnn_kernel(%arg0: i32, %arg1: i32, %arg2: i32, %arg3: memref<1x8x12xbf16, #tpu.memory_space<vmem>>, %arg4: memref<12x256xbf16, #tpu.memory_space<vmem>>, %arg5: memref<1x256xf32, #tpu.memory_space<vmem>>, %arg6: memref<8x8xbf16, #tpu.memory_space<vmem>>, %arg7: memref<1x8x128xf32, #tpu.memory_space<vmem>>, %arg8: memref<1x128xf32, #tpu.memory_space<vmem>>, %arg9: memref<1x128xf32, #tpu.memory_space<vmem>>, %arg10: memref<1x128xf32, #tpu.memory_space<vmem>>) attributes {dimension_semantics = [#tpu.dimension_semantics<parallel>, #tpu.dimension_semantics<parallel>, #tpu.dimension_semantics<arbitrary>], iteration_bounds = array<i64: 2, 1, 3>, scalar_prefetch = 0 : i64, scratch_operands = 3 : i64, tpu.core_type = #tpu.core_type<tc>, window_params = [{transform_indices = @transform_0, window_bounds = array<i64: 1, 8, 12>}, {transform_indices = @transform_1, window_bounds = array<i64: 12, 256>}, {transform_indices = @transform_2, window_bounds = array<i64: 1, 256>}, {pipeline_mode = #tpu.pipeline_mode<synchronous>, transform_indices = @transform_3, window_bounds = array<i64: 8, 8>}, {transform_indices = @transform_4, window_bounds = array<i64: 1, 8, 128>}]} {
    %c0_i32 = arith.constant 0 : i32
    %0 = arith.cmpi eq, %arg2, %c0_i32 : i32
    %1 = arith.extui %0 : i1 to i32
    %c0_i32_0 = arith.constant 0 : i32
    %2 = arith.cmpi ne, %1, %c0_i32_0 : i32
    scf.if %2 {
      %cst_38 = arith.constant 0.000000e+00 : f32
      %79 = vector.broadcast %cst_38 : f32 to vector<1x128xf32>
      %c0_39 = arith.constant 0 : index
      %c0_40 = arith.constant 0 : index
      %80 = vector.load %arg8[%c0_39, %c0_40] : memref<1x128xf32, #tpu.memory_space<vmem>>, vector<1x128xf32>
      tpu.vector_store %arg8[%c0_39, %c0_40], %79 {strides = array<i32>} : memref<1x128xf32, #tpu.memory_space<vmem>>, vector<1x128xf32>,
      %cst_41 = arith.constant 0xFF800000 : f32
      %81 = vector.broadcast %cst_41 : f32 to vector<1x128xf32>
      %c0_42 = arith.constant 0 : index
      %c0_43 = arith.constant 0 : index
      %82 = vector.load %arg9[%c0_42, %c0_43] : memref<1x128xf32, #tpu.memory_space<vmem>>, vector<1x128xf32>
      tpu.vector_store %arg9[%c0_42, %c0_43], %81 {strides = array<i32>} : memref<1x128xf32, #tpu.memory_space<vmem>>, vector<1x128xf32>,
      %cst_44 = arith.constant 0.000000e+00 : f32
      %83 = vector.broadcast %cst_44 : f32 to vector<1x128xf32>
      %c0_45 = arith.constant 0 : index
      %c0_46 = arith.constant 0 : index
      %84 = vector.load %arg10[%c0_45, %c0_46] : memref<1x128xf32, #tpu.memory_space<vmem>>, vector<1x128xf32>
      tpu.vector_store %arg10[%c0_45, %c0_46], %83 {strides = array<i32>} : memref<1x128xf32, #tpu.memory_space<vmem>>, vector<1x128xf32>,
    } else {
    }
    %c0 = arith.constant 0 : index
    %c0_1 = arith.constant 0 : index
    %c0_2 = arith.constant 0 : index
    %3 = vector.load %arg3[%c0, %c0_1, %c0_2] : memref<1x8x12xbf16, #tpu.memory_space<vmem>>, vector<1x8x12xbf16>
    %4 = vector.shape_cast %3 : vector<1x8x12xbf16> to vector<8x12xbf16>
    %c0_3 = arith.constant 0 : index
    %c0_4 = arith.constant 0 : index
    %5 = vector.load %arg4[%c0_3, %c0_4] : memref<12x256xbf16, #tpu.memory_space<vmem>>, vector<12x256xbf16>
    %cst = arith.constant dense<0.000000e+00> : vector<8x256xf32>
    %6 = tpu.matmul %4, %5, %cst {dimension_numbers = #tpu.dot_dimension_numbers<[1], [0], [0], [1], [0, 0, 1, 1], [], []>} : vector<8x12xbf16>, vector<12x256xbf16>, vector<8x256xf32> -> vector<8x256xf32>
    %c0_5 = arith.constant 0 : index
    %c0_6 = arith.constant 0 : index
    %7 = vector.load %arg5[%c0_5, %c0_6] : memref<1x256xf32, #tpu.memory_space<vmem>>, vector<1x256xf32>
    %8 = vector.broadcast %7 : vector<1x256xf32> to vector<8x256xf32>
    %9 = arith.addf %6, %8 : vector<8x256xf32>
    %10 = vector.extract_strided_slice %9 {offsets = [0, 0], sizes = [8, 128], strides = [1, 1]} : vector<8x256xf32> to vector<8x128xf32>
    %11 = vector.extract_strided_slice %9 {offsets = [0, 128], sizes = [8, 128], strides = [1, 1]} : vector<8x256xf32> to vector<8x128xf32>
    %cst_7 = arith.constant 0.000000e+00 : f32
    %12 = vector.broadcast %cst_7 : f32 to vector<8x128xf32>
    %13 = arith.subf %12, %11 : vector<8x128xf32>
    %cst_8 = arith.constant 0.000000e+00 : f32
    %14 = vector.broadcast %cst_8 : f32 to vector<8x128xf32>
    %15 = arith.minimumf %13, %14 : vector<8x128xf32>
    %16 = math.absf %13 : vector<8x128xf32>
    %cst_9 = arith.constant 0.000000e+00 : f32
    %17 = vector.broadcast %cst_9 : f32 to vector<8x128xf32>
    %18 = arith.subf %17, %16 : vector<8x128xf32>
    %19 = math.exp %18 : vector<8x128xf32>
    %cst_10 = arith.constant 1.000000e+00 : f32
    %20 = vector.broadcast %cst_10 : f32 to vector<8x128xf32>
    %21 = arith.addf %20, %19 : vector<8x128xf32>
    %22 = math.log %21 : vector<8x128xf32>
    %23 = arith.subf %15, %22 : vector<8x128xf32>
    %24 = arith.addf %23, %11 : vector<8x128xf32>
    %cst_11 = arith.constant 0.000000e+00 : f32
    %25 = vector.broadcast %cst_11 : f32 to vector<8x128xf32>
    %26 = arith.minimumf %10, %25 : vector<8x128xf32>
    %27 = math.absf %10 : vector<8x128xf32>
    %cst_12 = arith.constant 0.000000e+00 : f32
    %28 = vector.broadcast %cst_12 : f32 to vector<8x128xf32>
    %29 = arith.subf %28, %27 : vector<8x128xf32>
    %30 = math.exp %29 : vector<8x128xf32>
    %cst_13 = arith.constant 1.000000e+00 : f32
    %31 = vector.broadcast %cst_13 : f32 to vector<8x128xf32>
    %32 = arith.addf %31, %30 : vector<8x128xf32>
    %33 = math.log %32 : vector<8x128xf32>
    %34 = arith.subf %26, %33 : vector<8x128xf32>
    %c0_14 = arith.constant 0 : index
    %c0_15 = arith.constant 0 : index
    %35 = vector.load %arg6[%c0_14, %c0_15] : memref<8x8xbf16, #tpu.memory_space<vmem>>, vector<8x8xbf16>
    %36 = arith.truncf %24 : vector<8x128xf32> to vector<8x128xbf16>
    %37 = arith.extf %36 : vector<8x128xbf16> to vector<8x128xf32>
    %38 = arith.subf %24, %37 : vector<8x128xf32>
    %39 = arith.truncf %38 : vector<8x128xf32> to vector<8x128xbf16>
    %cst_16 = arith.constant dense<0.000000e+00> : vector<8x128xf32>
    %40 = tpu.matmul %35, %36, %cst_16 {dimension_numbers = #tpu.dot_dimension_numbers<[1], [0], [0], [1], [0, 0, 1, 1], [], []>} : vector<8x8xbf16>, vector<8x128xbf16>, vector<8x128xf32> -> vector<8x128xf32>
    %cst_17 = arith.constant dense<0.000000e+00> : vector<8x128xf32>
    %41 = tpu.matmul %35, %39, %cst_17 {dimension_numbers = #tpu.dot_dimension_numbers<[1], [0], [0], [1], [0, 0, 1, 1], [], []>} : vector<8x8xbf16>, vector<8x128xbf16>, vector<8x128xf32> -> vector<8x128xf32>
    %42 = arith.addf %40, %41 : vector<8x128xf32>
    %c0_18 = arith.constant 0 : index
    %c0_19 = arith.constant 0 : index
    %43 = vector.load %arg8[%c0_18, %c0_19] : memref<1x128xf32, #tpu.memory_space<vmem>>, vector<1x128xf32>
    %44 = vector.broadcast %43 : vector<1x128xf32> to vector<8x128xf32>
    %45 = arith.addf %44, %42 : vector<8x128xf32>
    %46 = arith.subf %24, %45 : vector<8x128xf32>
    %47 = arith.addf %34, %23 : vector<8x128xf32>
    %48 = arith.addf %47, %46 : vector<8x128xf32>
    %c0_20 = arith.constant 0 : index
    %c0_21 = arith.constant 0 : index
    %49 = vector.load %arg9[%c0_20, %c0_21] : memref<1x128xf32, #tpu.memory_space<vmem>>, vector<1x128xf32>
    %cst_22 = arith.constant dense<0xFF800000> : vector<128xf32>
    %50 = vector.multi_reduction <maximumf>, %48, %cst_22 [0] : vector<8x128xf32> to vector<128xf32>
    %51 = vector.shape_cast %50 : vector<128xf32> to vector<1x128xf32>
    %52 = arith.maximumf %49, %51 : vector<1x128xf32>
    %c0_23 = arith.constant 0 : index
    %c0_24 = arith.constant 0 : index
    %53 = vector.load %arg10[%c0_23, %c0_24] : memref<1x128xf32, #tpu.memory_space<vmem>>, vector<1x128xf32>
    %54 = arith.subf %49, %52 : vector<1x128xf32>
    %55 = math.exp %54 : vector<1x128xf32>
    %56 = arith.mulf %53, %55 : vector<1x128xf32>
    %57 = vector.broadcast %52 : vector<1x128xf32> to vector<8x128xf32>
    %58 = arith.subf %48, %57 : vector<8x128xf32>
    %59 = math.exp %58 : vector<8x128xf32>
    %60 = arith.truncf %59 : vector<8x128xf32> to vector<8x128xbf16>
    %cst_25 = arith.constant dense<0.000000e+00> : vector<8x128xf32>
    %61 = tpu.matmul %35, %60, %cst_25 {dimension_numbers = #tpu.dot_dimension_numbers<[1], [0], [0], [1], [0, 0, 1, 1], [], []>} : vector<8x8xbf16>, vector<8x128xbf16>, vector<8x128xf32> -> vector<8x128xf32>
    %62 = vector.broadcast %56 : vector<1x128xf32> to vector<8x128xf32>
    %63 = arith.addf %62, %61 : vector<8x128xf32>
    %64 = vector.broadcast %52 : vector<1x128xf32> to vector<8x128xf32>
    %65 = arith.subf %64, %46 : vector<8x128xf32>
    %66 = math.exp %65 : vector<8x128xf32>
    %67 = arith.mulf %63, %66 : vector<8x128xf32>
    %c0_26 = arith.constant 0 : index
    %c0_27 = arith.constant 0 : index
    %c0_28 = arith.constant 0 : index
    %68 = vector.load %arg7[%c0_26, %c0_27, %c0_28] : memref<1x8x128xf32, #tpu.memory_space<vmem>>, vector<1x8x128xf32>
    %69 = vector.shape_cast %68 : vector<1x8x128xf32> to vector<8x128xf32>
    %70 = vector.shape_cast %67 : vector<8x128xf32> to vector<1x8x128xf32>
    tpu.vector_store %arg7[%c0_26, %c0_27, %c0_28], %70 {strides = array<i32>} : memref<1x8x128xf32, #tpu.memory_space<vmem>>, vector<1x8x128xf32>,
    %c0_29 = arith.constant 0 : index
    %c0_30 = arith.constant 0 : index
    %71 = vector.load %arg8[%c0_29, %c0_30] : memref<1x128xf32, #tpu.memory_space<vmem>>, vector<1x128xf32>
    %cst_31 = arith.constant dense<0.000000e+00> : vector<128xf32>
    %72 = vector.multi_reduction <add>, %24, %cst_31 [0] : vector<8x128xf32> to vector<128xf32>
    %73 = vector.shape_cast %72 : vector<128xf32> to vector<1x128xf32>
    %74 = arith.addf %71, %73 : vector<1x128xf32>
    %c0_32 = arith.constant 0 : index
    %c0_33 = arith.constant 0 : index
    %75 = vector.load %arg8[%c0_32, %c0_33] : memref<1x128xf32, #tpu.memory_space<vmem>>, vector<1x128xf32>
    tpu.vector_store %arg8[%c0_32, %c0_33], %74 {strides = array<i32>} : memref<1x128xf32, #tpu.memory_space<vmem>>, vector<1x128xf32>,
    %c0_34 = arith.constant 0 : index
    %c0_35 = arith.constant 0 : index
    %76 = vector.load %arg9[%c0_34, %c0_35] : memref<1x128xf32, #tpu.memory_space<vmem>>, vector<1x128xf32>
    tpu.vector_store %arg9[%c0_34, %c0_35], %52 {strides = array<i32>} : memref<1x128xf32, #tpu.memory_space<vmem>>, vector<1x128xf32>,
    %77 = vector.extract_strided_slice %63 {offsets = [7, 0], sizes = [1, 128], strides = [1, 1]} : vector<8x128xf32> to vector<1x128xf32>
    %c0_36 = arith.constant 0 : index
    %c0_37 = arith.constant 0 : index
    %78 = vector.load %arg10[%c0_36, %c0_37] : memref<1x128xf32, #tpu.memory_space<vmem>>, vector<1x128xf32>
    tpu.vector_store %arg10[%c0_36, %c0_37], %77 {strides = array<i32>} : memref<1x128xf32, #tpu.memory_space<vmem>>, vector<1x128xf32>,
    return
  }
  func.func @transform_0(%arg0: i32, %arg1: i32, %arg2: i32) -> (i32, i32, i32) {
    %c0_i32 = arith.constant 0 : i32
    %c0_i32_0 = arith.constant 0 : i32
    return %arg0, %arg2, %c0_i32 : i32, i32, i32
  }
  func.func @transform_1(%arg0: i32, %arg1: i32, %arg2: i32) -> (i32, i32) {
    %c0_i32 = arith.constant 0 : i32
    %c0_i32_0 = arith.constant 0 : i32
    return %c0_i32, %arg1 : i32, i32
  }
  func.func @transform_2(%arg0: i32, %arg1: i32, %arg2: i32) -> (i32, i32) {
    %c0_i32 = arith.constant 0 : i32
    %c0_i32_0 = arith.constant 0 : i32
    return %c0_i32, %arg1 : i32, i32
  }
  func.func @transform_3(%arg0: i32, %arg1: i32, %arg2: i32) -> (i32, i32) {
    %c0_i32 = arith.constant 0 : i32
    %c0_i32_0 = arith.constant 0 : i32
    %c0_i32_1 = arith.constant 0 : i32
    return %c0_i32, %c0_i32_0 : i32, i32
  }
  func.func @transform_4(%arg0: i32, %arg1: i32, %arg2: i32) -> (i32, i32, i32) {
    %c0_i32 = arith.constant 0 : i32
    return %arg0, %arg2, %arg1 : i32, i32, i32
  }
}

</mosaic_0001>

<bundles_post_ra>
// kernel: tpu_custom_call.1
= control target key start
LH: loop header
LB: loop body
LE: loop exit
PB: predicated region body
PF: predicated region fallthrough
CT: control target
= control target key end

     0   :  { %9 = vsyncpa [#allocation6], 0  ;;  %s1145_s0 = inlined_call_operand.vmem [shape: bf16[2,24,12], index: 0, kind: input, shape index: {}]   ;;  %s1146_s1 = inlined_call_operand.vmem [shape: bf16[12,256], index: 1, kind: input, shape index: {}]   ;;  %s1147_s2 = inlined_call_operand.vmem [shape: f32[1,256], index: 2, kind: input, shape index: {}]   ;;  %s1148_s3 = inlined_call_operand.vmem [shape: bf16[8,8], index: 3, kind: input, shape index: {}]   ;;  %s1149_s4 = inlined_call_operand.hbm [shape: f32[2,24,128], index: 4, kind: output, shape index: {}]  }
   0x1   :  { %11 = vsyncpa [#allocation6 + $0x1], 0  ;;  %s964_s15 = smov 0   ;;  %s966_s16 = smov 0  }
   0x2   :  { %s968_s17 = smov 0   ;;  %s970_s18 = smov 0  }
   0x3   :  { %s972_s19 = smov 0   ;;  %s974_s20 = smov 0  }
   0x4   :  { %s976_s21 = smov 0   ;;  %s978_s22 = smov 0  }
   0x5 LB: > { %s696_s23 = sadd.s32 4294967295, %s931_s22   ;;  %s697_s24 = sadd.s32 4294967294, %s931_s22   ;;  %s931_s22 = sphi %s978_s22, %s17_s22   ;;  %s927_s21 = sphi %s976_s21, %s1158_s21   ;;  %s923_s20 = sphi %s974_s20, %s1157_s20   ;;  %s919_s19 = sphi %s972_s19, %s1156_s19   ;;  %s915_s18 = sphi %s970_s18, %s1155_s18   ;;  %s911_s17 = sphi %s968_s17, %s1154_s17   ;;  %s907_s16 = sphi %s966_s16, %s1153_s16   ;;  %s903_s15 = sphi %s964_s15, %s1152_s15  }
   0x6   : > { %s29_s25 = sadd.s32 1, %s923_s20  ;;  %s36_s26 = sadd.s32 1, %s927_s21 }
   0x7   : > { %p30_p0 = scmp.ge.s32.totalorder %s29_s25, 3  ;;  %p158_p1 = scmp.ne.s32.totalorder %s911_s17, %s907_s16 }
   0x8   : > { %p159_p2 = scmp.eq.s32.totalorder %s696_s23, 5  ;;  %p164_p5 = scmp.ne.s32.totalorder %s907_s16, %s903_s15 }
   0x9   : > { %s1160_s25 = smov (%p30_p0, %s29_s25), 0  ;;  %s1162_s26 = smov (!%p30_p0, %s36_s26), %s927_s21 }
   0xa   : > { %s142_s27 = ssub.s32 %s923_s20, %s1160_s25  ;;  %p1015_p3 = por %p159_p2, %p158_p1 }
   0xb   : > { %p38_p4 = scmp.ge.s32.totalorder %s1162_s26, 2  ;;  %p165_p6 = scmp.eq.s32.totalorder %s697_s24, 5 }
   0xc   : > { %p702_p7 = scmp.ge.s32.totalorder %s931_s22, 1  ;;  %p214_p9 = scmp.lt.s32.totalorder %s931_s22, 7 }
   0xd   : > { %s1164_s26 = smov (%p38_p4, %s1162_s26), 0  ;;  %p1024_p8 = por %p165_p6, %p164_p5 }
   0xe   : > { %s141_s30 = ssub.s32 %s927_s21, %s1164_s26  ;;  %s148_s5 = sadd.s32 1, %s911_s17 }
   0xf   : > { %s143_s6 = sor.u32 %s142_s27, %s141_s30  ;;  %p215_p10 = pnand %p702_p7, %p214_p9 }
  0x10   : > { %p146_p11 = scmp.eq.s32.totalorder %s143_s6, 0  ;;  %s249_s8 = sand.u32 (!%p215_p10), 1, %s907_s16  }
  0x11   : > { %218 = sbr.rel (%p215_p10) target bundleno = 792 (0x318), region = 36  ;;  %p252_p12 = scmp.lt.s32.totalorder (!%p215_p10), %s919_s19, 1 }
  0x12   : > { %s1033_s7 = scalar_select %p146_p11, %s911_s17, %s148_s5  }
  0x13   : > { %s1039_s9 = sshll.u32 (!%p215_p10), %s249_s8, 3  ;;  %p254_p13 = scmp.lt.s32.totalorder (!%p215_p10), %s915_s18, 2 }
  0x14   : > { %s251_s30 = scalar_lea.vmem (!%p215_p10), [#allocation5], %s1039_s9  ;;  %p705_p0 = scmp.ne.s32.totalorder (!%p215_p10), %s915_s18, 0 }
  0x18   : > { %s253_s10 = scalar_select %p252_p12, %s919_s19, 1 }
  0x19   : > { %s255_s11 = scalar_select %p254_p13, %s915_s18, 2 }
  0x1a   : > { %s742_s12 = smul.u32 3, %s253_s10  ;;  %v933_v0 = vmov (!%p705_p0), 0.0   ;;  %v934_v1 = vmov (!%p705_p0), -inf  }
  0x1b   : > { %275 = sbr.rel (%p705_p0) target bundleno = 34 (0x22), region = 40  ;;  %276 = vst [vmem:[#allocation2] sm:$0x1] (!%p705_p0), %v933_v0  ;;  %278 = vst [vmem:[#allocation4] sm:$0x1] (!%p705_p0), %v933_v0 }
  0x1c   : > { %s257_s13 = sadd.s32 %s742_s12, %s255_s11  ;;  %277 = vst [vmem:[#allocation3] sm:$0x1] (!%p705_p0), %v934_v1 }
  0x1d   : > { %s704_s14 = sshll.u32 %s257_s13, 2 }
  0x1e   : > { %s259_s27 = scalar_lea.vmem %s1145_s0, %s704_s14 }
  0x22 PF: > { %v820_v2 = vld [vmem:[%s1146_s1 + $0x4] ss:$8 sps:$4 sm:$0x3f]   ;;  %vm306_vm0 = vcmask 1045504   ;;  %v935_v4 = vmov 0   ;;  %vm302_vm1 = vcmask 97280   ;;  %v284_v8 = vlaneseq }
  0x23   : > { %v822_v3 = vld [vmem:[%s1146_s1] ss:$8 sps:$4 sm:$0x3f]   ;;  %708 = vmatprep.subr.msk.bf16.mxu0 %vm306_vm0, %v820_v2  ;;  %345 = vmatprep.mubr.bf16.mxu0 %v935_v4  ;;  %v936_v7 = vmov 0.0   ;;  %vm937_vm2 = vmmov 0   ;;  %vm383_vm3 = vcmask 1043456  }
  0x24   : > { %v308_v5 = vsel %vm306_vm0, %v822_v3, 0  ;;  %v279_v6 = vld [vmem:[%s259_s27] sm:$0xf]  ;;  %724 = vmatprep.subr.bf16.mxu1 %v936_v7  ;;  %726 = vmatprep.mubr.msk.bf16.mxu1 %vm937_vm2, %v936_v7  ;;  %v285_v9 = vshrl.u32 %v284_v8, 7  ;;  %vm379_vm4 = vcmask 64512   ;;  %s743_s24 = smul.u32 3, %s919_s19 }
  0x25   : > { %314 = vmatpush1.bf16.msra.mxu0 %v308_v5  ;;  %v282_v11 = vld [vmem:[%s1147_s2] sm:$0x3]  ;;  %v559_v54 = vld [vmem:[#allocation2] sm:$0x1]  ;;  %s587_s6 = sshll.u32 %s251_s30, 4  ;;  %s938_s13 = smov [#allocation5]   ;;  %s1090_s6 = int_to_ptr.vmem [resolvable:$true] %s587_s6 }
  0x26   : > { %730 = vmatprep.subr.bf16.mxu0 %v936_v7  ;;  %v1061_v10 = vsub.s32 0, %v285_v9  ;;  %v290_v12 = vsub.s32 1, %v285_v9  ;;  %v374_v47 = vld [vmem:[%s1148_s3] sm:$0xf]  ;;  %v712_v56 = vld [vmem:[#allocation2] ss:$0 sm:$0xff]  ;;  %s583_s27 = sadd.s32 %s915_s18, %s743_s24 }
  0x27   : > { %s715_s5 = sshll.u32 %s583_s27, 7  ;;  %s571_s18 = scalar_lea.sflag [#allocation6], %s249_s8 }
  0x28   : > { %709 = vmatmul.mubr.msk.bf16.vlgmr.msra.gmra.mrb[0].mxu0 %vm302_vm1, %v279_v6  ;;  %v287_v13 = vrot.slane %v282_v11, %v1061_v10  ;;  %v291_v14 = vrot.slane %v282_v11, %v290_v12  ;;  %s1088_s11 = scalar_lea.hbm %s1149_s4, %s715_s5  ;;  %s837_s12 = scalar_lea.vmem %s1090_s6, 128 }
  0x29   : > { %732 = vmatprep.mubr.msk.bf16.mxu0 %vm937_vm2, %v936_v7  ;;  %p838_p1 = scmp.ne.s32.totalorder %s1090_s6, %s837_s12  ;;  %s841_s14 = sshll.u32 %s938_s13, 4  ;;  %s842_s14 = int_to_ptr.vmem [resolvable:$false] %s841_s14 }
  0x2a   : > { %s843_s23 = scalar_lea.vmem %s842_s14, 256  ;;  %p844_p5 = scmp.lt.s32.totalorder %s1090_s6, %s842_s14 }
  0x2b   : > { %p839_p2 = pnand %p838_p1, %p1015_p3  ;;  %p845_p6 = scmp.lt.s32.totalorder %s843_s23, %s837_s12 }
  0x2d   : > { %p840_p4 = pneg %p839_p2  ;;  %p846_p7 = por %p845_p6, %p844_p5 }
  0x2f   : > { %p847_p9 = pnand %p846_p7, %p840_p4 }
  0xfb   : > { %v347_v15 = vpop.f32.mrb[0].mxu0 }
  0xfc   : > { %v348_v16 = vadd.f32 %v347_v15, %v287_v13  ;;  %v349_v17 = vpop.f32.mrb[1].mxu0  ;;  %v481_v13 = vld [vmem:[#allocation3] sm:$0x1] }
  0xfd   : > { %v350_v18 = vadd.f32 %v349_v17, %v291_v14  ;;  %v351_v19 = vpop.f32.mrb[2].mxu0 }
  0xfe   : > { %v366_v20 = vand.u32 2147483647, %v348_v16  ;;  %v352_v21 = vpop.f32.mrb[3].mxu0  ;;  %v365_v35 = vmin.f32 %v348_v16, 0.0 }
  0xff   : > { %v354_v22 = vsub.f32 0.0, %v350_v18 }
 0x100   : > { %v367_v23 = vsub.f32 0.0, %v366_v20 }
 0x101   : > { %v356_v24 = vand.u32 2147483647, %v354_v22  ;;  %v355_v36 = vmin.f32 %v354_v22, 0.0 }
 0x102   : > { %v368_v25 = vmul.f32 1.442695, %v367_v23 }
 0x103   : > { %v357_v26 = vsub.f32 0.0, %v356_v24 }
 0x104   : > { %823 = vpow2.f32 %v368_v25 }
 0x105   : > { %v358_v27 = vmul.f32 1.442695, %v357_v26  ;;  %v489_v26 = vld [vmem:[#allocation4] sm:$0x1] }
 0x107   : > { %825 = vpow2.f32 %v358_v27 }
 0x10e   : > { %v824_v28 = vpop.eup %823 }
 0x10f   : > { %v370_v29 = vadd.f32 1.0, %v824_v28 }
 0x111   : > { %v826_v30 = vpop.eup %825  ;;  %827 = vlog2.f32 %v370_v29 }
 0x112   : > { %v360_v31 = vadd.f32 1.0, %v826_v30 }
 0x114   : > { %829 = vlog2.f32 %v360_v31 }
 0x11b   : > { %v828_v32 = vpop.eup %827 }
 0x11c   : > { %v372_v33 = vmul.f32 0.6931472, %v828_v32 }
 0x11e   : > { %v830_v34 = vpop.eup %829  ;;  %v373_v38 = vsub.f32 %v365_v35, %v372_v33 }
 0x11f   : > { %v362_v37 = vmul.f32 0.6931472, %v830_v34 }
 0x121   : > { %v363_v39 = vsub.f32 %v355_v36, %v362_v37 }
 0x123   : > { %v364_v40 = vadd.f32 %v363_v39, %v350_v18  ;;  %v479_v41 = vadd.f32 %v373_v38, %v363_v39 }
 0x125   : > { %v560_v42 = vrot.slane %v364_v40, 4  ;;  %v375_v43 = vpack.c.bf16 %v364_v40, %v364_v40 }
 0x127   : > { %v428_v44 = vsel %vm383_vm3, %v375_v43, 0  ;;  %v376_v45 = vunpack.c.l.bf16 %v375_v43  ;;  %v561_v46 = vadd.f32 %v560_v42, %v364_v40 }
 0x128   : > { %731 = vmatpush3.bf16.msra.mxu0 %v428_v44 }
 0x129   : > { %v377_v48 = vsub.f32 %v364_v40, %v376_v45  ;;  %v562_v49 = vrot.slane %v561_v46, 2 }
 0x12b   : > { %v378_v50 = vpack.c.bf16 %v377_v48, %v377_v48  ;;  %733 = vmatmul.mubr.msk.bf16.vlgmr.msra.gmra.mrb[4].mxu0 %vm379_vm4, %v374_v47  ;;  %v563_v51 = vadd.f32 %v562_v49, %v561_v46 }
 0x12d   : > { %v385_v52 = vsel %vm383_vm3, %v378_v50, 0  ;;  %v564_v53 = vrot.slane %v563_v51, 1 }
 0x12e   : > { %725 = vmatpush3.bf16.msra.mxu1 %v385_v52 }
 0x12f   : > { %v565_v55 = vadd.f32 %v564_v53, %v563_v51  ;;  %736 = vmatprep.subr.bf16.mxu1 %v936_v7 }
 0x131   : > { %727 = vmatmul.mubr.msk.bf16.vlgmr.msra.gmra.mrb[0].mxu1 %vm379_vm4, %v374_v47  ;;  %v566_v57 = vadd.f32 %v565_v55, %v559_v54 }
 0x132   : > { %738 = vmatprep.mubr.msk.bf16.mxu1 %vm937_vm2, %v936_v7 }
 0x133   : > { %567 = vst [vmem:[#allocation2] sm:$0x1] %v566_v57 }
 0x1fe   : > { %v464_v58 = vpop.f32.mrb[4].mxu0 }
 0x1ff   : > { %v734_v59 = vpop.f32.mrb[5].mxu0 }
 0x200   : > { %v467_v60 = vpop.f32.mrb[6].mxu0 }
 0x201   : > { %v735_v61 = vpop.f32.mrb[7].mxu0 }
 0x204   : > { %v421_v62 = vpop.f32.mrb[0].mxu1 }
 0x205   : > { %v465_v63 = vadd.f32 %v464_v58, %v421_v62  ;;  %v728_v0 = vpop.f32.mrb[1].mxu1 }
 0x206   : > { %v424_v1 = vpop.f32.mrb[2].mxu1 }
 0x207   : > { %v477_v2 = vadd.f32 %v712_v56, %v465_v63  ;;  %v729_v3 = vpop.f32.mrb[3].mxu1 }
 0x209   : > { %v478_v4 = vsub.f32 %v364_v40, %v477_v2 }
 0x20b   : > { %v480_v5 = vadd.f32 %v479_v41, %v478_v4 }
 0x20d   : > { %v482_v6 = vrot.slane %v480_v5, 4 }
 0x20f   : > { %v483_v8 = vmax.f32 %v480_v5, %v482_v6 }
 0x211   : > { %v484_v9 = vrot.slane %v483_v8, 2 }
 0x213   : > { %v485_v11 = vmax.f32 %v483_v8, %v484_v9 }
 0x215   : > { %v486_v12 = vrot.slane %v485_v11, 1 }
 0x217   : > { %v487_v7 = vmax.f32 %v485_v11, %v486_v12 }
 0x219   : > { %v488_v14 = vmax.f32 %v481_v13, %v487_v7 }
 0x21b   : > { %v498_v15 = vrot.slane %v488_v14, %v1061_v10  ;;  %568 = vst [vmem:[#allocation3] sm:$0x1] %v488_v14  ;;  %v490_v16 = vsub.f32 %v481_v13, %v488_v14 }
 0x21d   : > { %v554_v17 = vsub.f32 %v498_v15, %v478_v4  ;;  %v500_v18 = vsub.f32 %v480_v5, %v498_v15  ;;  %v491_v23 = vmul.f32 1.442695, %v490_v16 }
 0x21f   : > { %v501_v19 = vmul.f32 1.442695, %v500_v18  ;;  %v555_v24 = vmul.f32 1.442695, %v554_v17 }
 0x221   : > { %831 = vpow2.f32 %v501_v19 }
 0x222   : > { %833 = vpow2.f32 %v491_v23 }
 0x223   : > { %835 = vpow2.f32 %v555_v24 }
 0x22b   : > { %v832_v20 = vpop.eup %831 }
 0x22c   : > { %v503_v21 = vpack.c.bf16 %v832_v20, %v832_v20  ;;  %v834_v25 = vpop.eup %833 }
 0x22d   : > { %v493_v27 = vmul.f32 %v834_v25, %v489_v26  ;;  %v836_v32 = vpop.eup %835 }
 0x22e   : > { %v505_v22 = vsel %vm383_vm3, %v503_v21, 0 }
 0x22f   : > { %737 = vmatpush3.bf16.msra.mxu1 %v505_v22  ;;  %v551_v28 = vrot.slane %v493_v27, %v1061_v10 }
 0x232   : > { %739 = vmatmul.mubr.msk.bf16.vlgmr.msra.gmra.mrb[4].mxu1 %vm379_vm4, %v374_v47 }
 0x305   : > { %v541_v29 = vpop.f32.mrb[4].mxu1 }
 0x306   : > { %v553_v30 = vadd.f32 %v551_v28, %v541_v29  ;;  %v740_v31 = vpop.f32.mrb[5].mxu1 }
 0x307   : > { %v544_v33 = vpop.f32.mrb[6].mxu1 }
 0x308   : > { %v557_v34 = vmul.f32 %v836_v32, %v553_v30  ;;  %569 = vst [vmem:[#allocation4 - $0x7] sm:$0x80] %v553_v30  ;;  %v741_v35 = vpop.f32.mrb[7].mxu1 }
 0x30a   : > { %558 = vst [vmem:[%s251_s30] sm:$0xff] %v557_v34 }
 0x30b   : > { %850 = shalt.err (!%p847_p9)
}
 0x30c   : > { %s851_s8 = scalar_lea.hbm %s1088_s11, 128  ;;  %s855_s24 = scalar_lea.hbm %s1149_s4, 768 }
 0x30d   : > { %p852_p10 = scmp.ne.s32.totalorder %s1088_s11, %s851_s8  ;;  %p856_p13 = scmp.lt.u32.totalorder %s1088_s11, %s1149_s4 }
 0x30e   : > { %p857_p0 = scmp.lt.u32.totalorder %s855_s24, %s851_s8  ;;  %p859_p2 = scmp.lt.u32.totalorder %s851_s8, %s1088_s11 }
 0x30f   : > { %p853_p11 = pnand %p852_p10, %p1015_p3 }
 0x310   : > { %p858_p1 = por %p857_p0, %p856_p13 }
 0x311   : > { %p854_p12 = pneg %p853_p11 }
 0x312   : > { %p860_p4 = por %p859_p2, %p858_p1 }
 0x314   : > { %p861_p5 = pnand %p860_p4, %p854_p12 }
 0x316   : > { %864 = shalt.err (!%p861_p5)
}
 0x317   : > { %744 = dma.vmem_to_hbm [thread:$0]  (%p1015_p3), %s1090_s6, 128, %s1088_s11, %s571_s18  }
 0x318 PF: > { %p750_p6 = scmp.ge.s32.totalorder %s931_s22, 2  ;;  %s599_s10 = sand.u32 1, %s903_s15  }
 0x319   : > { %s600_s19 = scalar_lea.sflag [#allocation6], %s599_s10 }
 0x31a   : > { %p747_p7 = pnand %p750_p6, %p1024_p8 }
 0x31c   : > { %898 = dma.done.wait (!%p747_p7), %s600_s19, 128  }
 0x31d   : > { %900 = vsyncadd (!%p747_p7), %s600_s19, 4294967168  ;;  %s17_s22 = sadd.s32 1, %s931_s22   ;;  %s1152_s15 = smov %s907_s16 }
 0x31e   : > { %p14_p9 = scmp.ge.s32.totalorder %s17_s22, 8   ;;  %s1153_s16 = smov %s911_s17 }
 0x31f   : > { %s1154_s17 = smov %s1033_s7  ;;  %s1155_s18 = smov %s923_s20 }
 0x320   : > { %s1156_s19 = smov %s927_s21  ;;  %s1157_s20 = smov %s1160_s25 }
 0x321   : > { %s1158_s21 = smov %s1164_s26  ;;  %16 = sbr.rel (!%p14_p9) target bundleno = 5 (0x5), region = 81 }
 0x328   :  { %605 = vsyncpa [#allocation6], 1 }
 0x329   :  { %607 = vsyncpa [#allocation6 + $0x1], 1 }

</bundles_post_ra>
